<compile_context>
chip_gen: v7x
topology: tpu7x:2x2x1
jax: 0.10.0
libtpu: 0.0.40
codegen_flags: <defaults>
</compile_context>

<pallas_src>
import functools

import jax
import jax.numpy as jnp
from jax import lax
from jax.experimental import pallas as pl
from jax.experimental.pallas import tpu as pltpu

BN_EPS = 1e-5


def _fused_residual_kernel(o_cols, x_ref, w_ref, gb_ref, o_ref):
    """Single-block Linear + BN + ReLU + residual concat.

    x_ref:  (B, I)       activation dtype
    w_ref:  (I, O)       matmul dtype (f32 or bf16)
    gb_ref: (2, O)       f32; row 0 = gamma, row 1 = beta
    o_ref:  (B, O + I)   activation dtype; [:, :O] = ReLU(BN(x@W)), [:, O:] = x
    """
    x = x_ref[...]
    # Linear.  Bias omitted: it is exactly cancelled by the BN mean subtraction.
    h = jnp.dot(x.astype(w_ref.dtype), w_ref[...],
                preferred_element_type=jnp.float32)
    # BatchNorm1d batch statistics (biased variance, two-pass / centered).
    inv_b = 1.0 / h.shape[0]
    mean = jnp.sum(h, axis=0, keepdims=True) * inv_b
    c = h - mean
    var = jnp.sum(c * c, axis=0, keepdims=True) * inv_b
    scale = gb_ref[0:1, :] * lax.rsqrt(var + BN_EPS)        # rsqrt -> EUP slot
    o_ref[:, :o_cols] = jnp.maximum(c * scale + gb_ref[1:2, :],
                                    0.0).astype(o_ref.dtype)
    # Residual passthrough written in the same pass (no extra HBM round trip
    # through a wrapper slice + concatenate).
    o_ref[:, o_cols:] = x.astype(o_ref.dtype)


def _tiled_residual_kernel(x_ref, w_ref, gb_ref, o_ref):
    """Per-feature-tile Linear + BN + ReLU.  BN stats are per-column, so a
    feature tile is fully self-contained.

    x_ref:  (B, I)    constant block index -> resident across the grid
    w_ref:  (I, TN)   pipelined per tile
    gb_ref: (2, TN)   f32; row 0 = gamma, row 1 = beta
    o_ref:  (B, TN)   lane-dense (TN multiple of 128)
    """
    x = x_ref[...]
    h = jnp.dot(x.astype(w_ref.dtype), w_ref[...],
                preferred_element_type=jnp.float32)
    inv_b = 1.0 / h.shape[0]
    mean = jnp.sum(h, axis=0, keepdims=True) * inv_b
    c = h - mean
    var = jnp.sum(c * c, axis=0, keepdims=True) * inv_b
    scale = gb_ref[0:1, :] * lax.rsqrt(var + BN_EPS)
    o_ref[...] = jnp.maximum(c * scale + gb_ref[1:2, :], 0.0).astype(o_ref.dtype)


def _vmem_usable_bytes():
    """Per-generation VMEM capacity minus headroom for Mosaic internal scratch."""
    cap = 64 << 20  # conservative default (v7x per-TensorCore)
    try:
        info = pltpu.get_tpu_info()
        cap = int(getattr(info, "vmem_capacity_bytes", cap) or cap)
    except Exception:
        pass
    # ~8 MiB headroom (v7x: 56 MiB usable; v5e/v6e: ~120 MiB usable).
    return max(cap - (8 << 20), cap * 3 // 4)


def residual_forward(x, w, b, gamma, beta, *, matmul_dtype=None, tn=None,
                     force_tiled=False):
    """Residual forward: concat([ReLU(BatchNorm1d(x @ w + b)), x], axis=1).

    x: (B, I).  w: (I, O).  b, gamma, beta: (O,).
    matmul_dtype: optional cast for the matmul inputs (e.g. jnp.bfloat16 --
                  recommended on v5e where HBM bandwidth is the limiter);
                  MXU accumulation and BN/ReLU stay in f32.
    """
    # nn.Linear bias: exactly cancelled by the BN mean subtraction, so it is
    # accepted for API parity but never sent to the kernel.
    del b
    B, I = x.shape
    Iw, O = w.shape
    assert Iw == I, (Iw, I)
    out_dtype = x.dtype

    wm = w if matmul_dtype is None else w.astype(matmul_dtype)
    gb = jnp.stack([gamma, beta]).astype(jnp.float32)            # (2, O)

    usable = _vmem_usable_bytes()
    itm_x = jnp.dtype(x.dtype).itemsize
    itm_w = jnp.dtype(wm.dtype).itemsize
    itm_o = jnp.dtype(out_dtype).itemsize

    # Padded (layout) sizes for the VMEM footprint estimate.
    b8 = pl.cdiv(B, 8) * 8
    i8 = pl.cdiv(I, 8) * 8
    i128 = pl.cdiv(I, 128) * 128
    o128 = pl.cdiv(O, 128) * 128

    fused_bytes = (b8 * i128 * itm_x                 # x
                   + i8 * o128 * itm_w               # W
                   + 8 * o128 * 4                    # gamma/beta (sublane-padded)
                   + 4 * b8 * o128 * 4               # h / centered / out temps (f32)
                   + b8 * (o128 + i128) * itm_o)     # fused (B, O+I) output

    if not force_tiled and fused_bytes <= usable:
        # ---- Fused single-block path (the common CTGAN-scale case). ----
        # NOTE: on v7x a 1-step grid uses only one TensorCore; at these shapes
        # the removed per-step / pipeline-ramp overhead and the fused concat
        # outweigh megacore sharding.
        vmem_limit = int(min(usable, max(16 << 20, 2 * fused_bytes)))
        return pl.pallas_call(
            functools.partial(_fused_residual_kernel, O),
            out_shape=jax.ShapeDtypeStruct((B, O + I), out_dtype),
            grid=(1,),
            in_specs=[
                pl.BlockSpec((B, I), lambda i: (0, 0)),
                pl.BlockSpec((I, O), lambda i: (0, 0)),
                pl.BlockSpec((2, O), lambda i: (0, 0)),
            ],
            out_specs=pl.BlockSpec((B, O + I), lambda i: (0, 0)),
            compiler_params=pltpu.CompilerParams(
                dimension_semantics=("arbitrary",),
                vmem_limit_bytes=vmem_limit,
            ),
        )(x, wm, gb)

    # ---- Tiled fallback: feature-axis grid (BN stats are per-column). ----
    if tn is None:
        # 256 fills the v6e/v7x MXU N dimension; drop to 128 for large B so
        # the (B, tn) f32 h block stays within the 64-vreg register file.
        tn = 128 if B >= 512 else 256
    tn = max(128, (int(tn) // 128) * 128)
    if (pl.cdiv(O, 128) * 128) % tn != 0:
        tn = 128               # avoid padding beyond the next 128 boundary
    n_tiles = pl.cdiv(O, tn)
    o_pad = n_tiles * tn

    if o_pad != O:
        pad = o_pad - O
        # Zero-padded columns give h = 0, gamma = 0 -> output 0; sliced off
        # below, and BN stats are per-column so padding never contaminates
        # real features.
        wm = jnp.pad(wm, ((0, 0), (0, pad)))
        gb = jnp.pad(gb, ((0, 0), (0, pad)))

    est = (b8 * i128 * itm_x          # x (resident across the grid)
           + 2 * i8 * tn * itm_w      # W tile, double-buffered
           + 2 * 8 * tn * 4           # gamma/beta tile, double-buffered
           + 2 * b8 * tn * itm_o      # out tile, double-buffered
           + 4 * b8 * tn * 4)         # in-kernel f32 temps
    vmem_limit = int(min(usable, max(16 << 20, 2 * est)))

    bn_out = pl.pallas_call(
        _tiled_residual_kernel,
        out_shape=jax.ShapeDtypeStruct((B, o_pad), out_dtype),
        grid=(n_tiles,),
        in_specs=[
            pl.BlockSpec((B, I), lambda j: (0, 0)),    # x: same block every step
            pl.BlockSpec((I, tn), lambda j: (0, j)),   # W tile
            pl.BlockSpec((2, tn), lambda j: (0, j)),   # gamma/beta tile
        ],
        out_specs=pl.BlockSpec((B, tn), lambda j: (0, j)),
        compiler_params=pltpu.CompilerParams(
            dimension_semantics=("parallel",),
            vmem_limit_bytes=vmem_limit,
        ),
    )(x, wm, gb)

    # Residual concat in the wrapper only on the (rare) tiled fallback.
    return jnp.concatenate([bn_out[:, :O], x], axis=1)


def residual_ref(x, w, b, gamma, beta, matmul_dtype=None):
    """Pure-JAX reference matching PyTorch training-mode semantics."""
    xm = x if matmul_dtype is None else x.astype(matmul_dtype)
    wm = w if matmul_dtype is None else w.astype(matmul_dtype)
    h = jnp.dot(xm, wm, preferred_element_type=jnp.float32) + b
    mean = h.mean(axis=0, keepdims=True)
    var = ((h - mean) ** 2).mean(axis=0, keepdims=True)   # biased batch var
    out = gamma * (h - mean) / jnp.sqrt(var + BN_EPS) + beta
    return jnp.concatenate([jnp.maximum(out, 0.0).astype(x.dtype), x], axis=1)


def init_params(key, i, o):
    """nn.Linear default init (U(-1/sqrt(i), 1/sqrt(i))); BN gamma=1, beta=0."""
    kw, kb = jax.random.split(key)
    bound = 1.0 / jnp.sqrt(jnp.float32(i))
    w = jax.random.uniform(kw, (i, o), jnp.float32, -bound, bound)
    b = jax.random.uniform(kb, (o,), jnp.float32, -bound, bound)
    return w, b, jnp.ones((o,), jnp.float32), jnp.zeros((o,), jnp.float32)


if __name__ == "__main__":
    key = jax.random.PRNGKey(0)

    def check(out, ref, shape, tol):
        assert out.shape == shape, (out.shape, shape)
        err = float(jnp.max(jnp.abs(out - ref)))
        assert jnp.allclose(out, ref, atol=tol, rtol=tol), err

    # Config 1: small CTGAN-ish shapes (fused single-block path).
    B, I, O = 8, 32, 64
    k1, k2, key = jax.random.split(key, 3)
    x = jax.random.normal(k1, (B, I), jnp.float32)
    w, b, gamma, beta = init_params(k2, I, O)
    out = jax.block_until_ready(residual_forward(x, w, b, gamma, beta))
    check(out, residual_ref(x, w, b, gamma, beta), (B, O + I), 1e-4)

    # Config 2: non-multiple-of-128 O (fused path, unaligned concat boundary).
    B, I, O = 16, 48, 160
    k1, k2, key = jax.random.split(key, 3)
    x = jax.random.normal(k1, (B, I), jnp.float32)
    w, b, gamma, beta = init_params(k2, I, O)
    out = jax.block_until_ready(residual_forward(x, w, b, gamma, beta))
    check(out, residual_ref(x, w, b, gamma, beta), (B, O + I), 1e-4)

    # Config 2 with bf16 matmul inputs (v5e/v6e/v7x MXU path); compare against
    # a reference computed with the same bf16 cast.
    out_bf16 = jax.block_until_ready(
        residual_forward(x, w, b, gamma, beta, matmul_dtype=jnp.bfloat16))
    ref_bf16 = residual_ref(x, w, b, gamma, beta, matmul_dtype=jnp.bfloat16)
    check(out_bf16, ref_bf16, (B, O + I), 2e-3)

    # Config 2 forced onto the tiled fallback (2-step feature grid) for coverage.
    out_tiled = jax.block_until_ready(
        residual_forward(x, w, b, gamma, beta, tn=128, force_tiled=True))
    check(out_tiled, residual_ref(x, w, b, gamma, beta), (B, O + I), 1e-4)

    print("KERNEL_OK")
</pallas_src>

<mosaic_0001>
module attributes {stable_mosaic.version = 11 : i64} {
  func.func @_fused_residual_kernel(%arg0: i32, %arg1: memref<8x32xf32, #tpu.memory_space<vmem>>, %arg2: memref<32x64xf32, #tpu.memory_space<vmem>>, %arg3: memref<2x64xf32, #tpu.memory_space<vmem>>, %arg4: memref<8x96xf32, #tpu.memory_space<vmem>>) attributes {dimension_semantics = [#tpu.dimension_semantics<arbitrary>], iteration_bounds = array<i64: 1>, scalar_prefetch = 0 : i64, scratch_operands = 0 : i64, tpu.core_type = #tpu.core_type<tc>, window_params = [{pipeline_mode = #tpu.pipeline_mode<synchronous>, transform_indices = @transform_0, window_bounds = array<i64: 8, 32>}, {pipeline_mode = #tpu.pipeline_mode<synchronous>, transform_indices = @transform_1, window_bounds = array<i64: 32, 64>}, {pipeline_mode = #tpu.pipeline_mode<synchronous>, transform_indices = @transform_2, window_bounds = array<i64: 2, 64>}, {pipeline_mode = #tpu.pipeline_mode<synchronous>, transform_indices = @transform_3, window_bounds = array<i64: 8, 96>}]} {
    %c0 = arith.constant 0 : index
    %c0_0 = arith.constant 0 : index
    %0 = vector.load %arg1[%c0, %c0_0] : memref<8x32xf32, #tpu.memory_space<vmem>>, vector<8x32xf32>
    %c0_1 = arith.constant 0 : index
    %c0_2 = arith.constant 0 : index
    %1 = vector.load %arg2[%c0_1, %c0_2] : memref<32x64xf32, #tpu.memory_space<vmem>>, vector<32x64xf32>
    %cst = arith.constant dense<0.000000e+00> : vector<8x64xf32>
    %2 = tpu.matmul %0, %1, %cst {dimension_numbers = #tpu.dot_dimension_numbers<[1], [0], [0], [1], [0, 0, 1, 1], [], []>} : vector<8x32xf32>, vector<32x64xf32>, vector<8x64xf32> -> vector<8x64xf32>
    %cst_3 = arith.constant dense<0.000000e+00> : vector<64xf32>
    %3 = vector.multi_reduction <add>, %2, %cst_3 [0] : vector<8x64xf32> to vector<64xf32>
    %4 = vector.shape_cast %3 : vector<64xf32> to vector<1x64xf32>
    %cst_4 = arith.constant 1.250000e-01 : f32
    %5 = vector.broadcast %cst_4 : f32 to vector<1x64xf32>
    %6 = arith.mulf %4, %5 : vector<1x64xf32>
    %7 = vector.broadcast %6 : vector<1x64xf32> to vector<8x64xf32>
    %8 = arith.subf %2, %7 : vector<8x64xf32>
    %9 = arith.mulf %8, %8 : vector<8x64xf32>
    %cst_5 = arith.constant dense<0.000000e+00> : vector<64xf32>
    %10 = vector.multi_reduction <add>, %9, %cst_5 [0] : vector<8x64xf32> to vector<64xf32>
    %11 = vector.shape_cast %10 : vector<64xf32> to vector<1x64xf32>
    %cst_6 = arith.constant 1.250000e-01 : f32
    %12 = vector.broadcast %cst_6 : f32 to vector<1x64xf32>
    %13 = arith.mulf %11, %12 : vector<1x64xf32>
    %c0_7 = arith.constant 0 : index
    %c0_8 = arith.constant 0 : index
    %14 = vector.load %arg3[%c0_7, %c0_8] : memref<2x64xf32, #tpu.memory_space<vmem>>, vector<1x64xf32>
    %cst_9 = arith.constant 9.99999974E-6 : f32
    %15 = vector.broadcast %cst_9 : f32 to vector<1x64xf32>
    %16 = arith.addf %13, %15 : vector<1x64xf32>
    %17 = math.rsqrt %16 : vector<1x64xf32>
    %18 = arith.mulf %14, %17 : vector<1x64xf32>
    %19 = vector.broadcast %18 : vector<1x64xf32> to vector<8x64xf32>
    %20 = arith.mulf %8, %19 : vector<8x64xf32>
    %c1 = arith.constant 1 : index
    %c0_10 = arith.constant 0 : index
    %21 = vector.load %arg3[%c1, %c0_10] : memref<2x64xf32, #tpu.memory_space<vmem>>, vector<1x64xf32>
    %22 = vector.broadcast %21 : vector<1x64xf32> to vector<8x64xf32>
    %23 = arith.addf %20, %22 : vector<8x64xf32>
    %cst_11 = arith.constant 0.000000e+00 : f32
    %24 = vector.broadcast %cst_11 : f32 to vector<8x64xf32>
    %25 = arith.maximumf %23, %24 : vector<8x64xf32>
    %c0_12 = arith.constant 0 : index
    %c0_13 = arith.constant 0 : index
    %26 = vector.load %arg4[%c0_12, %c0_13] : memref<8x96xf32, #tpu.memory_space<vmem>>, vector<8x64xf32>
    tpu.vector_store %arg4[%c0_12, %c0_13], %25 {strides = array<i32>} : memref<8x96xf32, #tpu.memory_space<vmem>>, vector<8x64xf32>,
    %c0_14 = arith.constant 0 : index
    %c64 = arith.constant 64 : index
    %27 = vector.load %arg4[%c0_14, %c64] : memref<8x96xf32, #tpu.memory_space<vmem>>, vector<8x32xf32>
    tpu.vector_store %arg4[%c0_14, %c64], %0 {strides = array<i32>} : memref<8x96xf32, #tpu.memory_space<vmem>>, vector<8x32xf32>,
    return
  }
  func.func @transform_0(%arg0: i32) -> (i32, i32) {
    %c0_i32 = arith.constant 0 : i32
    %c0_i32_0 = arith.constant 0 : i32
    %c0_i32_1 = arith.constant 0 : i32
    return %c0_i32, %c0_i32_0 : i32, i32
  }
  func.func @transform_1(%arg0: i32) -> (i32, i32) {
    %c0_i32 = arith.constant 0 : i32
    %c0_i32_0 = arith.constant 0 : i32
    %c0_i32_1 = arith.constant 0 : i32
    return %c0_i32, %c0_i32_0 : i32, i32
  }
  func.func @transform_2(%arg0: i32) -> (i32, i32) {
    %c0_i32 = arith.constant 0 : i32
    %c0_i32_0 = arith.constant 0 : i32
    %c0_i32_1 = arith.constant 0 : i32
    return %c0_i32, %c0_i32_0 : i32, i32
  }
  func.func @transform_3(%arg0: i32) -> (i32, i32) {
    %c0_i32 = arith.constant 0 : i32
    %c0_i32_0 = arith.constant 0 : i32
    %c0_i32_1 = arith.constant 0 : i32
    return %c0_i32, %c0_i32_0 : i32, i32
  }
}

</mosaic_0001>

<bundles_post_ra>
// kernel: tpu_custom_call.1
= control target key start
LH: loop header
LB: loop body
LE: loop exit
PB: predicated region body
PF: predicated region fallthrough
CT: control target
= control target key end

     0   :  { %8 = vsyncpa [#allocation3], 0  ;;  %s365_s0 = inlined_call_operand.hbm [shape: f32[8,32], index: 0, kind: input, shape index: {}]   ;;  %s366_s1 = inlined_call_operand.hbm [shape: f32[32,64], index: 1, kind: input, shape index: {}]   ;;  %s367_s2 = inlined_call_operand.vmem [shape: f32[2,64], index: 2, kind: input, shape index: {}]   ;;  %s368_s3 = inlined_call_operand.hbm [shape: f32[8,96], index: 3, kind: output, shape index: {}]  }
   0x1   :  { %9 = vsyncpa [#allocation6], 0 }
   0x2   :  { %10 = vsyncpa [#allocation4], 0  ;;  %s284_s12 = smov [#allocation2]   ;;  %s285_s14 = smov [#allocation5]  }
   0x3   :  { %s17_s13 = sshll.u32 %s284_s12, 4  ;;  %s26_s15 = sshll.u32 %s285_s14, 4  ;;  %s18_s13 = int_to_ptr.vmem [resolvable:$true] %s17_s13  ;;  %s313_s15 = int_to_ptr.vmem [resolvable:$true] %s26_s15 }
   0x4   :  { %s212_s18 = scalar_lea.hbm %s365_s0, 128 }
   0x5   :  { %p213_p0 = scmp.ne.s32.totalorder %s365_s0, %s212_s18  ;;  %p216_p1 = scmp.lt.u32.totalorder %s212_s18, %s365_s0 }
   0x7   :  { %p218_p2 = pnand %p216_p1, %p213_p0 }
   0x9   :  { %221 = shalt.err (!%p218_p2)
}
   0xa   :  { %s222_s23 = scalar_lea.vmem %s18_s13, 128  ;;  %p227_p4 = scmp.lt.s32.totalorder %s18_s13, %s18_s13 }
   0xb   :  { %p223_p3 = scmp.ne.s32.totalorder %s18_s13, %s222_s23  ;;  %p228_p5 = scmp.lt.s32.totalorder %s222_s23, %s222_s23 }
   0xd   :  { %p229_p6 = por %p228_p5, %p227_p4 }
   0xf   :  { %p230_p7 = pnand %p229_p6, %p223_p3 }
  0x11   :  { %233 = shalt.err (!%p230_p7)
}
  0x12   :  { %20 = dma.hbm_to_vmem [thread:$0]  %s365_s0, 128, %s18_s13, [#allocation3]  }
  0x13   :  { %s234_s28 = scalar_lea.hbm %s366_s1, 512 }
  0x14   :  { %p235_p8 = scmp.ne.s32.totalorder %s366_s1, %s234_s28  ;;  %p238_p9 = scmp.lt.u32.totalorder %s234_s28, %s366_s1 }
  0x16   :  { %p240_p10 = pnand %p238_p9, %p235_p8 }
  0x18   :  { %243 = shalt.err (!%p240_p10)
}
  0x19   :  { %s244_s6 = scalar_lea.vmem %s313_s15, 512  ;;  %p249_p12 = scmp.lt.s32.totalorder %s313_s15, %s313_s15 }
  0x1a   :  { %p245_p11 = scmp.ne.s32.totalorder %s313_s15, %s244_s6  ;;  %p250_p13 = scmp.lt.s32.totalorder %s244_s6, %s244_s6 }
  0x1c   :  { %p251_p0 = por %p250_p13, %p249_p12 }
  0x1e   :  { %p252_p1 = pnand %p251_p0, %p245_p11 }
  0x20   :  { %255 = shalt.err (!%p252_p1)
}
  0x21   :  { %s286_s0 = smov 128   ;;  %s287_s7 = smov 8  }
  0x22   :  { %32 = dma.hbm_to_vmem [thread:$0]  %s366_s1, 512, %s313_s15, [#allocation6], %s286_s0, %s286_s0, %s287_s7  }
  0x23   :  { %278 = dma.done.wait [#allocation3], 128  }
  0x24   :  { %279 = vsyncadd [#allocation3], 4294967168 }
  0x25   :  { %280 = dma.done.wait [#allocation6], 512  }
  0x26   :  { %281 = vsyncadd [#allocation6], 4294966784  ;;  %v288_v0 = vmov 0.0|0.0   ;;  %vm289_vm0 = vmmov 0   ;;  %v290_v1 = vmov 0.0   ;;  %v42_v2 = vld [vmem:[#allocation5] sm:$0xff]  ;;  %v143_v30 = vlaneseq }
  0x27   :  { %195 = vmatprep.subr.bf16.mxu0 %v288_v0  ;;  %192 = vmatprep.mubr.msk.f32.mxu0 %vm289_vm0, %v290_v1  ;;  %v43_v3 = vld [vmem:[#allocation5 + $0x8] sm:$0xff]  ;;  %v44_v4 = vld [vmem:[#allocation5 + $0x10] sm:$0xff]  ;;  %v45_v6 = vld [vmem:[#allocation5 + $0x18] sm:$0xff]  ;;  %s291_s10 = smov 64   ;;  %vm46_vm1 = vcmask 261120   ;;  %vm120_vm2 = vcmask 523264  }
  0x28   :  { %v196_v5 = vpack.c.bf16 %v43_v3, %v42_v2  ;;  %v41_v7 = vld [vmem:[#allocation2] sm:$0xff]  ;;  %v199_v8 = vpack.c.bf16 %v45_v6, %v44_v4  ;;  %v144_v31 = vshrl.u32 %v143_v30, 7  ;;  %s292_s14 = smov [#allocation7]   ;;  %vm159_vm3 = vcmask 785920  }
  0x29   :  { %156 = vrot.lane.b32.xlu0 %v41_v7, %s291_s10  ;;  %v139_v32 = vld [vmem:[%s367_s2] sm:$0x1]  ;;  %v178_v37 = vld [vmem:[%s367_s2 + $0x1] ss:$0 sm:$0xff]  ;;  %s167_s15 = sshll.u32 %s292_s14, 4  ;;  %s168_s15 = int_to_ptr.vmem [resolvable:$true] %s167_s15 }
  0x2a   :  { %197 = vmatpush3.bf16.msra.mxu0 %v196_v5  ;;  %v145_v33 = vsub.s32 0, %v144_v31  ;;  %s256_s16 = scalar_lea.vmem %s168_s15, 128  ;;  %p261_p3 = scmp.lt.s32.totalorder %s168_s15, %s168_s15 }
  0x2b   :  { %198 = vmatprep.subr.bf16.mxu0 %v288_v0  ;;  %p257_p2 = scmp.ne.s32.totalorder %s168_s15, %s256_s16  ;;  %p262_p4 = scmp.lt.s32.totalorder %s256_s16, %s256_s16 }
  0x2d   :  { %p263_p5 = por %p262_p4, %p261_p3 }
  0x2e   :  { %200 = vmatpush3.bf16.msra.mxu0 %v199_v8 }
  0x2f   :  { %p264_p6 = pnand %p263_p5, %p257_p2 }
  0x31   :  { %193 = vmatmul.mubr.msk.f32.vlgmr.msra.gmra.mrb[0].mxu0 %vm46_vm1, %v41_v7 }
  0x9b   :  { %v157_v41 = vpop.permute.xlu0 %156 }
 0x104   :  { %v116_v9 = vpop.f32.mrb[0].mxu0 }
 0x105   :  { %v121_v10 = vsel %vm120_vm2, %v116_v9, 0.0  ;;  %v194_v11 = vpop.f32.mrb[1].mxu0 }
 0x106   :  { %v122_v12 = vrot.slane %v121_v10, 4 }
 0x108   :  { %v123_v13 = vadd.f32 %v122_v12, %v121_v10 }
 0x10a   :  { %v124_v14 = vrot.slane %v123_v13, 2 }
 0x10c   :  { %v125_v15 = vadd.f32 %v124_v14, %v123_v13 }
 0x10e   :  { %v126_v16 = vrot.slane %v125_v15, 1 }
 0x110   :  { %v127_v17 = vadd.f32 %v126_v16, %v125_v15 }
 0x112   :  { %v128_v18 = vmul.f32 0.125, %v127_v17 }
 0x114   :  { %v129_v19 = vsub.f32 %v116_v9, %v128_v18 }
 0x116   :  { %v130_v20 = vmul.f32 %v129_v19, %v129_v19 }
 0x118   :  { %v131_v21 = vsel %vm120_vm2, %v130_v20, 0.0 }
 0x119   :  { %v132_v22 = vrot.slane %v131_v21, 4 }
 0x11b   :  { %v133_v23 = vadd.f32 %v132_v22, %v131_v21 }
 0x11d   :  { %v134_v24 = vrot.slane %v133_v23, 2 }
 0x11f   :  { %v135_v25 = vadd.f32 %v134_v24, %v133_v23 }
 0x121   :  { %v136_v26 = vrot.slane %v135_v25, 1 }
 0x123   :  { %v137_v27 = vadd.f32 %v136_v26, %v135_v25 }
 0x125   :  { %v138_v28 = vmul.f32 0.125, %v137_v27 }
 0x127   :  { %v140_v29 = vadd.f32 1e-05, %v138_v28 }
 0x129   :  { %210 = vrsqrt.f32 %v140_v29 }
 0x133   :  { %v211_v34 = vpop.eup %210 }
 0x134   :  { %v142_v35 = vmul.f32 %v211_v34, %v139_v32 }
 0x136   :  { %v146_v36 = vrot.slane %v142_v35, %v145_v33 }
 0x138   :  { %v147_v38 = vmul.f32 %v146_v36, %v129_v19 }
 0x13a   :  { %v153_v39 = vadd.f32 %v178_v37, %v147_v38 }
 0x13c   :  { %v154_v40 = vmax.f32 %v153_v39, 0.0 }
 0x13e   :  { %155 = vst.msk [vmem:[#allocation7] sm:$0xff] %vm120_vm2, %v154_v40 }
 0x13f   :  { %160 = vst.msk [vmem:[#allocation7] sm:$0xff] %vm159_vm3, %v157_v41 }
 0x140   :  { %267 = shalt.err (!%p264_p6)
}
 0x141   :  { %s268_s18 = scalar_lea.hbm %s368_s3, 128 }
 0x142   :  { %p269_p7 = scmp.ne.s32.totalorder %s368_s3, %s268_s18  ;;  %p272_p8 = scmp.lt.u32.totalorder %s268_s18, %s368_s3 }
 0x144   :  { %p274_p9 = pnand %p272_p8, %p269_p7 }
 0x146   :  { %277 = shalt.err (!%p274_p9)
}
 0x147   :  { %170 = dma.vmem_to_hbm [thread:$0]  %s168_s15, 128, %s368_s3, [#allocation4]  }
 0x148   :  { %282 = dma.done.wait [#allocation4], 128  }
 0x149   :  { %283 = vsyncadd [#allocation4], 4294967168 }
 0x14a   :  { %174 = vsyncpa [#allocation3], 1 }
 0x14b   :  { %175 = vsyncpa [#allocation6], 1 }
 0x14c   :  { %176 = vsyncpa [#allocation4], 1 }

</bundles_post_ra>
